<compile_context>
chip_gen: v5e
topology: v5e:2x2
jax: 0.10.0
libtpu: 0.0.40
codegen_flags: <defaults>
</compile_context>

<pallas_src>
import jax
import jax.numpy as jnp
from jax.experimental import pallas as pl
from jax.experimental.pallas import tpu as pltpu

_LANES = 128
# (8192, 128) f32 tile = 4 MiB; 2 inputs x 2 pipeline buffers = 16 MiB.
# bf16 inputs halve that. Fits v7x's 64 MiB physical VMEM with room to spare.
_MAX_TILE_ROWS = 8192
# Above the v5e (16 MiB) / v7x (32 MiB) scoped defaults, well under physical
# VMEM on every generation (v5e/v6e 128 MiB, v7x 64 MiB per TensorCore).
_VMEM_LIMIT_BYTES = 48 * 1024 * 1024
# 8 independent f32 accumulator vregs (64 x 128 = 32 KiB of scratch).
_WIDE_ACC_ROWS = 64


def _make_rmse_kernel(tile_rows: int, acc_rows: int, tiles_per_split: int,
                      num_full_tiles: int, padded_tiles: int, full_rows: int):
    """Sum-of-squared-differences kernel with a resident VMEM accumulator."""
    need_mask = num_full_tiles < padded_tiles

    def kernel(pred_ref, label_ref, out_ref, acc_ref):
        c = pl.program_id(0)                    # split (TensorCore) index
        j = pl.program_id(1)                    # tile index within the split
        tile_idx = c * tiles_per_split + j      # logical tile index

        @pl.when(j == 0)
        def _init():
            acc_ref[...] = jnp.zeros_like(acc_ref)
            out_ref[...] = jnp.zeros_like(out_ref)

        # Upcast BEFORE the subtract: keeps cancellation precision for
        # near-equal bf16/fp16 inputs. VPU cast is free under the HBM bound.
        d = pred_ref[...].astype(jnp.float32) - label_ref[...].astype(jnp.float32)
        sq = d * d

        def _accumulate(vals):
            # Fold (tile_rows, 128) into (acc_rows, 128) with pure element-wise
            # vreg adds across 8-sublane-aligned slices (no per-step XLU).
            acc_ref[...] += vals.reshape(-1, acc_rows, _LANES).sum(axis=0)

        if need_mask:
            @pl.when(tile_idx < num_full_tiles)
            def _interior():                    # fully in-bounds tile: no mask
                _accumulate(sq)

            @pl.when(tile_idx >= num_full_tiles)
            def _edge():                        # partial or fully-padded tile
                row = (jax.lax.broadcasted_iota(jnp.int32, (tile_rows, 1), 0)
                       + tile_idx * tile_rows)
                # Select (not multiply) so garbage/NaN rows cannot propagate.
                _accumulate(jnp.where(row < full_rows, sq, jnp.float32(0.0)))
        else:
            _accumulate(sq)

        @pl.when(j == tiles_per_split - 1)
        def _finalize():
            # One sublane (XLU) reduce per split; only (1, 128) goes to HBM.
            out_ref[...] = acc_ref[...].sum(axis=0, keepdims=True)

    return kernel


def _sq_diff_sum_pallas(p2: jax.Array, l2: jax.Array, tile_rows: int,
                        acc_rows: int, full_rows: int) -> jax.Array:
    """Sum of (p2 - l2)^2 over the first `full_rows` rows of (rows, 128) slabs."""
    num_tiles = pl.cdiv(full_rows, tile_rows)
    # Always split across 2 TensorCores when there are >= 2 tiles (v7x); the
    # extra split is negligible bookkeeping on single-TC chips (v5e/v6e).
    n_splits = 2 if num_tiles >= 2 else 1
    tiles_per_split = pl.cdiv(num_tiles, n_splits)
    padded_tiles = n_splits * tiles_per_split     # >= num_tiles (odd counts)
    num_full_tiles = full_rows // tile_rows       # tiles fully inside the data

    def in_map(c, j):
        # Clamp so the padded (duplicate) tile of an odd split still issues an
        # in-bounds DMA; its contribution is zeroed by the in-kernel row mask.
        t = c * tiles_per_split + j
        return (jnp.minimum(t, num_tiles - 1), 0)

    in_spec = pl.BlockSpec((tile_rows, _LANES), in_map)

    itemsize = jnp.dtype(p2.dtype).itemsize
    cost = pl.CostEstimate(
        flops=3 * full_rows * _LANES,                      # sub + mul + add
        transcendentals=0,
        bytes_accessed=2 * full_rows * _LANES * itemsize + n_splits * _LANES * 4)

    partials = pl.pallas_call(
        _make_rmse_kernel(tile_rows, acc_rows, tiles_per_split,
                          num_full_tiles, padded_tiles, full_rows),
        out_shape=jax.ShapeDtypeStruct((n_splits, 1, _LANES), jnp.float32),
        grid=(n_splits, tiles_per_split),
        in_specs=[in_spec, in_spec],
        out_specs=pl.BlockSpec((None, 1, _LANES), lambda c, j: (c, 0, 0)),
        scratch_shapes=[pltpu.VMEM((acc_rows, _LANES), jnp.float32)],
        compiler_params=pltpu.CompilerParams(
            dimension_semantics=("parallel", "arbitrary"),
            vmem_limit_bytes=_VMEM_LIMIT_BYTES,
            allow_input_fusion=[True, True]),
        cost_estimate=cost,
    )(p2, l2)
    # Tiny final cross-lane reduce of n_splits * 128 partial sums.
    return jnp.sum(partials)


def _rmse_forward(pred: jax.Array, label: jax.Array,
                  max_tile_rows: int = _MAX_TILE_ROWS) -> jax.Array:
    assert pred.shape == label.shape
    n = pred.size
    if n == 0:
        return jnp.float32(jnp.nan)  # matches torch: mean of empty -> nan

    p = pred.reshape(-1)
    l = label.reshape(-1)

    # Sub-32-bit dtypes pack along sublanes: keep tile_rows aligned so the
    # (tile_rows, 128) BlockSpec satisfies the packed tiling (f32:8, bf16:16,
    # int8/fp8:32 rows).
    min_itemsize = min(jnp.dtype(p.dtype).itemsize, jnp.dtype(l.dtype).itemsize)
    row_align = max(8, 32 // max(min_itemsize, 1))

    full_rows = n // _LANES
    main = full_rows * _LANES

    sq_sum = jnp.float32(0.0)
    tail_start = 0
    if full_rows >= row_align:
        acc_rows = _WIDE_ACC_ROWS if full_rows >= _WIDE_ACC_ROWS else row_align
        tile_rows = min(max_tile_rows, full_rows)
        tile_rows = max(acc_rows, (tile_rows // acc_rows) * acc_rows)
        # Reshape is free when n is a multiple of 128 (common for conv feature
        # maps); otherwise the slice/reshape fuses into the pallas_call via
        # allow_input_fusion instead of materializing an extra HBM copy.
        p_main = p if main == n else p[:main]
        l_main = l if main == n else l[:main]
        sq_sum = sq_sum + _sq_diff_sum_pallas(
            p_main.reshape(full_rows, _LANES),
            l_main.reshape(full_rows, _LANES),
            tile_rows, acc_rows, full_rows)
        tail_start = main
    # else: fewer than row_align full rows -> not worth a kernel launch,
    # everything is reduced in the plain-JAX tail below.

    if tail_start < n:
        dt = (p[tail_start:].astype(jnp.float32)
              - l[tail_start:].astype(jnp.float32))
        sq_sum = sq_sum + jnp.sum(dt * dt)

    # n is a static Python int: bake 1/n and multiply instead of dividing.
    return jnp.sqrt(sq_sum * jnp.float32(1.0 / n))


@jax.custom_vjp
def rmse_loss(pred: jax.Array, label: jax.Array) -> jax.Array:
    """sqrt(mean((pred - label)^2)) — forward runs the Pallas kernel."""
    return _rmse_forward(pred, label)


def _rmse_fwd(pred, label):
    out = _rmse_forward(pred, label)
    return out, (pred, label, out)


def _rmse_bwd(residuals, g):
    pred, label, out = residuals
    n = pred.size
    # d/dpred sqrt(mean((p-l)^2)) = (p - l) / (n * rmse); inf/nan at rmse==0,
    # matching the mathematical (and torch autograd) behavior.
    scale = g / (jnp.float32(n) * out)
    diff = (pred.astype(jnp.float32) - label.astype(jnp.float32)) * scale
    return diff.astype(pred.dtype), (-diff).astype(label.dtype)


rmse_loss.defvjp(_rmse_fwd, _rmse_bwd)


def _check(shape, seed, rtol, dtype=jnp.float32, max_tile_rows=None):
    k1, k2 = jax.random.split(jax.random.PRNGKey(seed))
    pred = jax.random.normal(k1, shape, dtype=jnp.float32).astype(dtype)
    label = jax.random.normal(k2, shape, dtype=jnp.float32).astype(dtype)
    if max_tile_rows is None:
        got = jax.block_until_ready(rmse_loss(pred, label))
    else:
        got = jax.block_until_ready(
            _rmse_forward(pred, label, max_tile_rows=max_tile_rows))
    ref = jnp.sqrt(jnp.mean(
        (pred.astype(jnp.float32) - label.astype(jnp.float32)) ** 2))
    assert jnp.allclose(got, ref, rtol=rtol, atol=1e-6), (shape, got, ref)
    return pred, label


if __name__ == "__main__":
    key = jax.random.PRNGKey(0)

    # Primary small demo (NCHW, like the PyTorch module's typical inputs).
    pred, label = _check((2, 4, 16, 16), seed=0, rtol=1e-5)

    # Gradient check: custom_vjp (analytic) vs autodiff of the pure-JAX ref.
    g_got = jax.grad(rmse_loss)(pred, label)
    g_ref = jax.grad(lambda p, l: jnp.sqrt(jnp.mean((p - l) ** 2)))(pred, label)
    assert jnp.allclose(g_got, g_ref, rtol=1e-4, atol=1e-6)

    # Ragged case: masked partial last tile, <128-elem JAX tail, fused slice.
    _check((2, 3, 150, 150), seed=1, rtol=1e-4)

    # bf16 native streaming with in-kernel upcast.
    _check((2, 8, 64, 64), seed=2, rtol=1e-4, dtype=jnp.bfloat16)

    # Odd tile count with forced small tiles: exercises the 2-way split with a
    # clamped, fully-masked padded tile (the v7x always-split path).
    _check((2, 4, 32, 80), seed=3, rtol=1e-4, max_tile_rows=64)

    print("KERNEL_OK")
</pallas_src>

<mosaic_0001>
module attributes {stable_mosaic.version = 11 : i64} {
  func.func @kernel(%arg0: i32, %arg1: i32, %arg2: memref<16x128xf32, #tpu.memory_space<vmem>>, %arg3: memref<16x128xf32, #tpu.memory_space<vmem>>, %arg4: memref<1x1x128xf32, #tpu.memory_space<vmem>>, %arg5: memref<8x128xf32, #tpu.memory_space<vmem>>) attributes {dimension_semantics = [#tpu.dimension_semantics<parallel>, #tpu.dimension_semantics<arbitrary>], iteration_bounds = array<i64: 1, 1>, scalar_prefetch = 0 : i64, scratch_operands = 1 : i64, tpu.core_type = #tpu.core_type<tc>, window_params = [{transform_indices = @transform_0, window_bounds = array<i64: 16, 128>}, {transform_indices = @transform_1, window_bounds = array<i64: 16, 128>}, {transform_indices = @transform_2, window_bounds = array<i64: 1, 1, 128>}]} {
    %c0_i32 = arith.constant 0 : i32
    %0 = arith.cmpi eq, %arg1, %c0_i32 : i32
    %1 = arith.extui %0 : i1 to i32
    %c0_i32_0 = arith.constant 0 : i32
    %2 = arith.cmpi ne, %1, %c0_i32_0 : i32
    scf.if %2 {
      %cst_10 = arith.constant 0.000000e+00 : f32
      %15 = vector.broadcast %cst_10 : f32 to vector<8x128xf32>
      %c0_11 = arith.constant 0 : index
      %c0_12 = arith.constant 0 : index
      %16 = vector.load %arg5[%c0_11, %c0_12] : memref<8x128xf32, #tpu.memory_space<vmem>>, vector<8x128xf32>
      tpu.vector_store %arg5[%c0_11, %c0_12], %15 {strides = array<i32>} : memref<8x128xf32, #tpu.memory_space<vmem>>, vector<8x128xf32>,
      %cst_13 = arith.constant 0.000000e+00 : f32
      %17 = vector.broadcast %cst_13 : f32 to vector<1x128xf32>
      %c0_14 = arith.constant 0 : index
      %c0_15 = arith.constant 0 : index
      %c0_16 = arith.constant 0 : index
      %18 = vector.load %arg4[%c0_14, %c0_15, %c0_16] : memref<1x1x128xf32, #tpu.memory_space<vmem>>, vector<1x1x128xf32>
      %19 = vector.shape_cast %18 : vector<1x1x128xf32> to vector<1x128xf32>
      %20 = vector.shape_cast %17 : vector<1x128xf32> to vector<1x1x128xf32>
      tpu.vector_store %arg4[%c0_14, %c0_15, %c0_16], %20 {strides = array<i32>} : memref<1x1x128xf32, #tpu.memory_space<vmem>>, vector<1x1x128xf32>,
    } else {
    }
    %c0 = arith.constant 0 : index
    %c0_1 = arith.constant 0 : index
    %3 = vector.load %arg2[%c0, %c0_1] : memref<16x128xf32, #tpu.memory_space<vmem>>, vector<16x128xf32>
    %c0_2 = arith.constant 0 : index
    %c0_3 = arith.constant 0 : index
    %4 = vector.load %arg3[%c0_2, %c0_3] : memref<16x128xf32, #tpu.memory_space<vmem>>, vector<16x128xf32>
    %5 = arith.subf %3, %4 : vector<16x128xf32>
    %6 = arith.mulf %5, %5 : vector<16x128xf32>
    %c0_4 = arith.constant 0 : index
    %c0_5 = arith.constant 0 : index
    %7 = vector.load %arg5[%c0_4, %c0_5] : memref<8x128xf32, #tpu.memory_space<vmem>>, vector<8x128xf32>
    %8 = vector.shape_cast %6 : vector<16x128xf32> to vector<2x8x128xf32>
    %cst = arith.constant dense<0.000000e+00> : vector<8x128xf32>
    %9 = vector.multi_reduction <add>, %8, %cst [0] : vector<2x8x128xf32> to vector<8x128xf32>
    %10 = arith.addf %7, %9 : vector<8x128xf32>
    %c0_6 = arith.constant 0 : index
    %c0_7 = arith.constant 0 : index
    %11 = vector.load %arg5[%c0_6, %c0_7] : memref<8x128xf32, #tpu.memory_space<vmem>>, vector<8x128xf32>
    tpu.vector_store %arg5[%c0_6, %c0_7], %10 {strides = array<i32>} : memref<8x128xf32, #tpu.memory_space<vmem>>, vector<8x128xf32>,
    %c0_i32_8 = arith.constant 0 : i32
    %12 = arith.cmpi eq, %arg1, %c0_i32_8 : i32
    %13 = arith.extui %12 : i1 to i32
    %c0_i32_9 = arith.constant 0 : i32
    %14 = arith.cmpi ne, %13, %c0_i32_9 : i32
    scf.if %14 {
      %c0_10 = arith.constant 0 : index
      %c0_11 = arith.constant 0 : index
      %15 = vector.load %arg5[%c0_10, %c0_11] : memref<8x128xf32, #tpu.memory_space<vmem>>, vector<8x128xf32>
      %cst_12 = arith.constant dense<0.000000e+00> : vector<128xf32>
      %16 = vector.multi_reduction <add>, %15, %cst_12 [0] : vector<8x128xf32> to vector<128xf32>
      %17 = vector.shape_cast %16 : vector<128xf32> to vector<1x128xf32>
      %c0_13 = arith.constant 0 : index
      %c0_14 = arith.constant 0 : index
      %c0_15 = arith.constant 0 : index
      %18 = vector.load %arg4[%c0_13, %c0_14, %c0_15] : memref<1x1x128xf32, #tpu.memory_space<vmem>>, vector<1x1x128xf32>
      %19 = vector.shape_cast %18 : vector<1x1x128xf32> to vector<1x128xf32>
      %20 = vector.shape_cast %17 : vector<1x128xf32> to vector<1x1x128xf32>
      tpu.vector_store %arg4[%c0_13, %c0_14, %c0_15], %20 {strides = array<i32>} : memref<1x1x128xf32, #tpu.memory_space<vmem>>, vector<1x1x128xf32>,
    } else {
    }
    return
  }
  func.func @transform_0(%arg0: i32, %arg1: i32) -> (i32, i32) {
    %c1_i32 = arith.constant 1 : i32
    %0 = arith.muli %arg0, %c1_i32 : i32
    %1 = arith.addi %0, %arg1 : i32
    %c0_i32 = arith.constant 0 : i32
    %2 = arith.minsi %1, %c0_i32 : i32
    %c0_i32_0 = arith.constant 0 : i32
    %c0_i32_1 = arith.constant 0 : i32
    return %2, %c0_i32_0 : i32, i32
  }
  func.func @transform_1(%arg0: i32, %arg1: i32) -> (i32, i32) {
    %c1_i32 = arith.constant 1 : i32
    %0 = arith.muli %arg0, %c1_i32 : i32
    %1 = arith.addi %0, %arg1 : i32
    %c0_i32 = arith.constant 0 : i32
    %2 = arith.minsi %1, %c0_i32 : i32
    %c0_i32_0 = arith.constant 0 : i32
    %c0_i32_1 = arith.constant 0 : i32
    return %2, %c0_i32_0 : i32, i32
  }
  func.func @transform_2(%arg0: i32, %arg1: i32) -> (i32, i32, i32) {
    %c0_i32 = arith.constant 0 : i32
    %c0_i32_0 = arith.constant 0 : i32
    %c0_i32_1 = arith.constant 0 : i32
    return %arg0, %c0_i32, %c0_i32_0 : i32, i32, i32
  }
}

</mosaic_0001>

<bundles_post_ra>
// kernel: tpu_custom_call.1
= control target key start
LH: loop header
LB: loop body
LE: loop exit
PB: predicated region body
PF: predicated region fallthrough
CT: control target
= control target key end

     0   :  { %7 = vsyncpa [#allocation4], 0  ;;  %s229_s0 = inlined_call_operand.hbm [shape: f32[16,128], index: 0, kind: input, shape index: {}]   ;;  %s230_s1 = inlined_call_operand.hbm [shape: f32[16,128], index: 1, kind: input, shape index: {}]   ;;  %s231_s2 = inlined_call_operand.hbm [shape: f32[1,1,128], index: 2, kind: output, shape index: {}]  }
   0x1   :  { %8 = vsyncpa [#allocation7], 0 }
   0x2   :  { %9 = vsyncpa [#allocation5], 0  ;;  %s20_s11 = sshll.u32 %s229_s0, 4  ;;  %s199_s12 = smov [#allocation3]   ;;  %s21_s11 = int_to_ptr.hbm [resolvable:$true] %s20_s11 }
   0x3   :  { %s22_s13 = sshll.u32 %s199_s12, 4  ;;  %s39_s16 = sshll.u32 %s230_s1, 4  ;;  %s23_s13 = int_to_ptr.vmem [resolvable:$true] %s22_s13  ;;  %s40_s16 = int_to_ptr.hbm [resolvable:$true] %s39_s16 }
   0x4   :  { %s200_s17 = smov 128   ;;  %s201_s18 = smov 8  }
   0x5   :  { %28 = dma.hbm_to_vmem [thread:$0]  %s21_s11, 256, %s23_s13, [#allocation4], %s200_s17, %s200_s17, %s201_s18  }
   0x6   :  { %s202_s19 = smov [#allocation6]  }
   0x7   :  { %s41_s20 = sshll.u32 %s202_s19, 4  ;;  %s42_s20 = int_to_ptr.vmem [resolvable:$true] %s41_s20 }
   0x8   :  { %47 = dma.hbm_to_vmem [thread:$0]  %s40_s16, 256, %s42_s20, [#allocation7], %s200_s17, %s200_s17, %s201_s18  }
   0x9   :  { %193 = dma.done.wait [#allocation4], 256  }
   0xa   :  { %194 = vsyncadd [#allocation4], 4294967040 }
   0xb   :  { %195 = dma.done.wait [#allocation7], 256  }
   0xc   :  { %196 = vsyncadd [#allocation7], 4294967040  ;;  %v203_v0 = vmov 0.0   ;;  %v70_v1 = vld [vmem:[#allocation3] sm:$0xff]  ;;  %v71_v2 = vld [vmem:[#allocation3 + $0x8] sm:$0xff]  ;;  %s204_s0 = smov [#allocation8]  }
   0xd   :  { %69 = vst [vmem:[#allocation8] sm:$0x1] %v203_v0  ;;  %v72_v3 = vld [vmem:[#allocation6] sm:$0xff]  ;;  %v73_v4 = vld [vmem:[#allocation6 + $0x8] sm:$0xff]  ;;  %s98_s1 = sshll.u32 %s204_s0, 4  ;;  %s100_s23 = sshll.u32 %s231_s2, 4  ;;  %s99_s1 = int_to_ptr.vmem [resolvable:$true] %s98_s1  ;;  %s101_s23 = int_to_ptr.hbm [resolvable:$true] %s100_s23 }
   0xe   :  { %v74_v5 = vsub.f32 %v70_v1, %v72_v3  ;;  %v75_v6 = vsub.f32 %v71_v2, %v73_v4 }
  0x10   :  { %v76_v7 = vmul.f32 %v74_v5, %v74_v5  ;;  %v77_v8 = vmul.f32 %v75_v6, %v75_v6 }
  0x12   :  { %v79_v9 = vadd.f32 %v77_v8, %v76_v7 }
  0x14   :  { %v86_v10 = vrot.slane %v79_v9, 4 }
  0x16   :  { %v87_v11 = vadd.f32 %v86_v10, %v79_v9 }
  0x18   :  { %v88_v12 = vrot.slane %v87_v11, 2 }
  0x1a   :  { %v89_v13 = vadd.f32 %v88_v12, %v87_v11 }
  0x1c   :  { %v90_v14 = vrot.slane %v89_v13, 1 }
  0x1e   :  { %v91_v15 = vadd.f32 %v90_v14, %v89_v13 }
  0x20   :  { %92 = vst [vmem:[#allocation8] sm:$0x1] %v91_v15 }
  0x21   :  { %103 = dma.vmem_to_hbm [thread:$0]  %s99_s1, 16, %s101_s23, [#allocation5]  }
  0x22   :  { %197 = dma.done.wait [#allocation5], 16  }
  0x23   :  { %198 = vsyncadd [#allocation5], 4294967280 }
  0x24   :  { %108 = vsyncpa [#allocation4], 1 }
  0x25   :  { %109 = vsyncpa [#allocation7], 1 }
  0x26   :  { %110 = vsyncpa [#allocation5], 1 }

</bundles_post_ra>
